<compile_context>
chip_gen: v7x
topology: tpu7x:2x2x1
jax: 0.10.0
libtpu: 0.0.40
codegen_flags: <defaults>
</compile_context>

<pallas_src>
import math

import jax
import jax.numpy as jnp
from jax.experimental import pallas as pl
from jax.experimental.pallas import tpu as pltpu

_HIDDEN = 512


def _round_up(x, m):
    return ((x + m - 1) // m) * m


def _mlp_kernel(x_ref, w1_ref, b1_ref, w2_ref, b2_ref, w3_ref, b3_ref, o_ref):
    # x arrives as f32 straight from HBM; cast to the matmul dtype here (cheap
    # VPU op hidden under the MXU) instead of a wrapper-side astype/pad copy.
    x = x_ref[...].astype(w1_ref.dtype)
    # fc1 + ReLU  (bf16 operands, f32 MXU accumulation)
    h = jnp.dot(x, w1_ref[...], preferred_element_type=jnp.float32)
    h = jnp.maximum(h + b1_ref[...], 0.0)
    # fc2 + ReLU
    h = jnp.dot(h.astype(w2_ref.dtype), w2_ref[...],
                preferred_element_type=jnp.float32)
    h = jnp.maximum(h + b2_ref[...], 0.0)
    # fc3 (no activation); output block is lane-padded to a 128 multiple.
    h = jnp.dot(h.astype(w3_ref.dtype), w3_ref[...],
                preferred_element_type=jnp.float32)
    o_ref[...] = (h + b3_ref[...]).astype(o_ref.dtype)


def prepare_params(params, compute_dtype=jnp.bfloat16):
    """One-time prep (call OUTSIDE the hot path): cast weights to the matmul
    dtype, keep biases in f32, and lane-pad the final layer to a multiple of
    128 so the output store is lane-dense."""
    w1, b1, w2, b2, w3, b3 = (params["w1"], params["b1"], params["w2"],
                              params["b2"], params["w3"], params["b3"])
    O = int(w3.shape[1])
    O_pad = max(_round_up(O, 128), 128)
    if O_pad != O:
        w3 = jnp.pad(w3, ((0, 0), (0, O_pad - O)))
        b3 = jnp.pad(b3, ((0, 0), (0, O_pad - O)))
    return dict(
        w1=w1.astype(compute_dtype), b1=b1.astype(jnp.float32),
        w2=w2.astype(compute_dtype), b2=b2.astype(jnp.float32),
        w3=w3.astype(compute_dtype), b3=b3.astype(jnp.float32),
        out_features=O,
    )


def _pick_batch_tile(B, cap=1024):
    """Large tiles to amortize the ~0.35us per-grid-step overhead, but always
    aim for >= 2 grid steps so v7x's two TensorCores both get work (on
    v5e/v6e the extra step costs essentially nothing)."""
    if B <= 8:
        return 8
    n_tiles = max(2, pl.cdiv(B, cap))
    return _round_up(pl.cdiv(B, n_tiles), 8)


def text_to_mel(x, prepared, *, batch_tile=None, out_dtype=jnp.float32,
                keep_padded=False):
    """TextToMel forward pass as a fused Pallas kernel.

    x: [B, input_dim] float32
    prepared: output of prepare_params() (raw param dicts are auto-prepared).
    keep_padded: return the [B_pad, O_pad] array (lets the consumer fuse the
                 slice and avoid an extra HBM round trip on the output).
    """
    if "out_features" not in prepared:
        prepared = prepare_params(prepared)
    w1, b1, w2, b2, w3, b3 = (prepared["w1"], prepared["b1"], prepared["w2"],
                              prepared["b2"], prepared["w3"], prepared["b3"])
    O = prepared["out_features"]

    B, D = x.shape
    H = w1.shape[1]
    O_pad = w3.shape[1]

    if batch_tile is None:
        batch_tile = _pick_batch_tile(B)
    bt = batch_tile
    B_pad = _round_up(B, bt)
    if B_pad != B:
        # Padded rows compute bias-driven values and are sliced off below.
        x = jnp.pad(x, ((0, B_pad - B), (0, 0)))
    grid = (B_pad // bt,)

    # Advisory cost estimate for XLA scheduling around the custom call.
    out_isz = jnp.dtype(out_dtype).itemsize
    flops = 2 * B_pad * (D * H + H * H + H * O_pad)
    bytes_accessed = (B_pad * D * x.dtype.itemsize + B_pad * O_pad * out_isz
                      + sum(int(a.size) * a.dtype.itemsize
                            for a in (w1, b1, w2, b2, w3, b3)))
    cost = pl.CostEstimate(flops=int(flops), transcendentals=0,
                           bytes_accessed=int(bytes_accessed))

    # Tight VMEM budget from the actual footprint: double-buffered x/out
    # tiles, (possibly double-buffered) resident weights, hidden-activation
    # scratch, plus slack.  Stays at a few MiB -- leaves headroom on v7x.
    wsz = w1.dtype.itemsize
    weight_bytes = (D * H + H * H + H * O_pad) * wsz + (2 * H + O_pad) * 4
    io_bytes = bt * D * x.dtype.itemsize + bt * O_pad * out_isz
    scratch_bytes = 3 * bt * H * 4
    vmem_limit = int(max(2 * (weight_bytes + io_bytes) + scratch_bytes
                         + (4 << 20), 8 << 20))

    def const_spec(shape):
        # Grid-invariant block (constant index_map): Pallas skips re-DMA.
        return pl.BlockSpec(shape, lambda i: (0,) * len(shape))

    out = pl.pallas_call(
        _mlp_kernel,
        out_shape=jax.ShapeDtypeStruct((B_pad, O_pad), out_dtype),
        grid_spec=pltpu.PrefetchScalarGridSpec(
            num_scalar_prefetch=0,
            grid=grid,
            in_specs=[
                pl.BlockSpec((bt, D), lambda i: (i, 0)),  # x tile (f32)
                const_spec((D, H)),                       # w1
                const_spec((1, H)),                       # b1
                const_spec((H, H)),                       # w2
                const_spec((1, H)),                       # b2
                const_spec((H, O_pad)),                   # w3 (lane-padded)
                const_spec((1, O_pad)),                   # b3 (lane-padded)
            ],
            out_specs=pl.BlockSpec((bt, O_pad), lambda i: (i, 0)),
        ),
        compiler_params=pltpu.CompilerParams(
            dimension_semantics=("parallel",),
            vmem_limit_bytes=vmem_limit,
        ),
        cost_estimate=cost,
    )(x, w1, b1, w2, b2, w3, b3)

    if keep_padded:
        return out  # [B_pad, O_pad]; consumer handles O / padded rows.
    return out[:B, :O]


def init_params(key, input_dim, output_dim, hidden=_HIDDEN):
    """Deterministic synthetic init (PyTorch-like uniform fan_in bounds)."""
    ks = jax.random.split(key, 6)

    def lin(kw, kb, fan_in, fan_out):
        bound = 1.0 / math.sqrt(fan_in)
        w = jax.random.uniform(kw, (fan_in, fan_out), jnp.float32, -bound, bound)
        b = jax.random.uniform(kb, (1, fan_out), jnp.float32, -bound, bound)
        return w, b

    w1, b1 = lin(ks[0], ks[1], input_dim, hidden)
    w2, b2 = lin(ks[2], ks[3], hidden, hidden)
    w3, b3 = lin(ks[4], ks[5], hidden, output_dim)
    return dict(w1=w1, b1=b1, w2=w2, b2=b2, w3=w3, b3=b3)


def reference(x, p, compute_dtype=jnp.bfloat16):
    """Pure-JAX reference mirroring the kernel's bf16-operand / f32-acc math."""
    f32 = jnp.float32

    def mm(a, w):
        return jnp.dot(a.astype(compute_dtype).astype(f32),
                       w.astype(compute_dtype).astype(f32))

    h = jnp.maximum(mm(x, p["w1"]) + p["b1"], 0.0)
    h = jnp.maximum(mm(h, p["w2"]) + p["b2"], 0.0)
    return mm(h, p["w3"]) + p["b3"]


if __name__ == "__main__":
    key = jax.random.PRNGKey(0)
    kx, kp = jax.random.split(key)

    input_dim, output_dim, batch = 32, 80, 16
    x = jax.random.normal(kx, (batch, input_dim), jnp.float32)
    params = init_params(kp, input_dim, output_dim)

    # One-time weight cast/pad outside the per-call path.
    prepared = prepare_params(params)

    out = jax.block_until_ready(text_to_mel(x, prepared))

    ref = reference(x, params)
    assert out.shape == (batch, output_dim), out.shape
    err = float(jnp.max(jnp.abs(out - ref)))
    assert jnp.allclose(out, ref, atol=1e-2, rtol=1e-2), f"max abs err {err}"

    print("KERNEL_OK")
</pallas_src>

<mosaic_0001>
module attributes {stable_mosaic.version = 11 : i64} {
  func.func @_mlp_kernel(%arg0: i32, %arg1: memref<8x32xf32, #tpu.memory_space<vmem>>, %arg2: memref<32x512xbf16, #tpu.memory_space<vmem>>, %arg3: memref<1x512xf32, #tpu.memory_space<vmem>>, %arg4: memref<512x512xbf16, #tpu.memory_space<vmem>>, %arg5: memref<1x512xf32, #tpu.memory_space<vmem>>, %arg6: memref<512x128xbf16, #tpu.memory_space<vmem>>, %arg7: memref<1x128xf32, #tpu.memory_space<vmem>>, %arg8: memref<8x128xf32, #tpu.memory_space<vmem>>) attributes {dimension_semantics = [#tpu.dimension_semantics<parallel>], iteration_bounds = array<i64: 2>, scalar_prefetch = 0 : i64, scratch_operands = 0 : i64, tpu.core_type = #tpu.core_type<tc>, window_params = [{transform_indices = @transform_0, window_bounds = array<i64: 8, 32>}, {pipeline_mode = #tpu.pipeline_mode<synchronous>, transform_indices = @transform_1, window_bounds = array<i64: 32, 512>}, {pipeline_mode = #tpu.pipeline_mode<synchronous>, transform_indices = @transform_2, window_bounds = array<i64: 1, 512>}, {pipeline_mode = #tpu.pipeline_mode<synchronous>, transform_indices = @transform_3, window_bounds = array<i64: 512, 512>}, {pipeline_mode = #tpu.pipeline_mode<synchronous>, transform_indices = @transform_4, window_bounds = array<i64: 1, 512>}, {pipeline_mode = #tpu.pipeline_mode<synchronous>, transform_indices = @transform_5, window_bounds = array<i64: 512, 128>}, {pipeline_mode = #tpu.pipeline_mode<synchronous>, transform_indices = @transform_6, window_bounds = array<i64: 1, 128>}, {transform_indices = @transform_7, window_bounds = array<i64: 8, 128>}]} {
    %c0 = arith.constant 0 : index
    %c0_0 = arith.constant 0 : index
    %0 = vector.load %arg1[%c0, %c0_0] : memref<8x32xf32, #tpu.memory_space<vmem>>, vector<8x32xf32>
    %1 = arith.truncf %0 : vector<8x32xf32> to vector<8x32xbf16>
    %c0_1 = arith.constant 0 : index
    %c0_2 = arith.constant 0 : index
    %2 = vector.load %arg2[%c0_1, %c0_2] : memref<32x512xbf16, #tpu.memory_space<vmem>>, vector<32x512xbf16>
    %cst = arith.constant dense<0.000000e+00> : vector<8x512xf32>
    %3 = tpu.matmul %1, %2, %cst {dimension_numbers = #tpu.dot_dimension_numbers<[1], [0], [0], [1], [0, 0, 1, 1], [], []>} : vector<8x32xbf16>, vector<32x512xbf16>, vector<8x512xf32> -> vector<8x512xf32>
    %c0_3 = arith.constant 0 : index
    %c0_4 = arith.constant 0 : index
    %4 = vector.load %arg3[%c0_3, %c0_4] : memref<1x512xf32, #tpu.memory_space<vmem>>, vector<1x512xf32>
    %5 = vector.broadcast %4 : vector<1x512xf32> to vector<8x512xf32>
    %6 = arith.addf %3, %5 : vector<8x512xf32>
    %cst_5 = arith.constant 0.000000e+00 : f32
    %7 = vector.broadcast %cst_5 : f32 to vector<8x512xf32>
    %8 = arith.maximumf %6, %7 : vector<8x512xf32>
    %9 = arith.truncf %8 : vector<8x512xf32> to vector<8x512xbf16>
    %c0_6 = arith.constant 0 : index
    %c0_7 = arith.constant 0 : index
    %10 = vector.load %arg4[%c0_6, %c0_7] : memref<512x512xbf16, #tpu.memory_space<vmem>>, vector<512x512xbf16>
    %cst_8 = arith.constant dense<0.000000e+00> : vector<8x512xf32>
    %11 = tpu.matmul %9, %10, %cst_8 {dimension_numbers = #tpu.dot_dimension_numbers<[1], [0], [0], [1], [0, 0, 1, 1], [], []>} : vector<8x512xbf16>, vector<512x512xbf16>, vector<8x512xf32> -> vector<8x512xf32>
    %c0_9 = arith.constant 0 : index
    %c0_10 = arith.constant 0 : index
    %12 = vector.load %arg5[%c0_9, %c0_10] : memref<1x512xf32, #tpu.memory_space<vmem>>, vector<1x512xf32>
    %13 = vector.broadcast %12 : vector<1x512xf32> to vector<8x512xf32>
    %14 = arith.addf %11, %13 : vector<8x512xf32>
    %cst_11 = arith.constant 0.000000e+00 : f32
    %15 = vector.broadcast %cst_11 : f32 to vector<8x512xf32>
    %16 = arith.maximumf %14, %15 : vector<8x512xf32>
    %17 = arith.truncf %16 : vector<8x512xf32> to vector<8x512xbf16>
    %c0_12 = arith.constant 0 : index
    %c0_13 = arith.constant 0 : index
    %18 = vector.load %arg6[%c0_12, %c0_13] : memref<512x128xbf16, #tpu.memory_space<vmem>>, vector<512x128xbf16>
    %cst_14 = arith.constant dense<0.000000e+00> : vector<8x128xf32>
    %19 = tpu.matmul %17, %18, %cst_14 {dimension_numbers = #tpu.dot_dimension_numbers<[1], [0], [0], [1], [0, 0, 1, 1], [], []>} : vector<8x512xbf16>, vector<512x128xbf16>, vector<8x128xf32> -> vector<8x128xf32>
    %c0_15 = arith.constant 0 : index
    %c0_16 = arith.constant 0 : index
    %20 = vector.load %arg7[%c0_15, %c0_16] : memref<1x128xf32, #tpu.memory_space<vmem>>, vector<1x128xf32>
    %21 = vector.broadcast %20 : vector<1x128xf32> to vector<8x128xf32>
    %22 = arith.addf %19, %21 : vector<8x128xf32>
    %c0_17 = arith.constant 0 : index
    %c0_18 = arith.constant 0 : index
    %23 = vector.load %arg8[%c0_17, %c0_18] : memref<8x128xf32, #tpu.memory_space<vmem>>, vector<8x128xf32>
    tpu.vector_store %arg8[%c0_17, %c0_18], %22 {strides = array<i32>} : memref<8x128xf32, #tpu.memory_space<vmem>>, vector<8x128xf32>,
    return
  }
  func.func @transform_0(%arg0: i32) -> (i32, i32) {
    %c0_i32 = arith.constant 0 : i32
    %c0_i32_0 = arith.constant 0 : i32
    return %arg0, %c0_i32 : i32, i32
  }
  func.func @transform_1(%arg0: i32) -> (i32, i32) {
    %c0_i32 = arith.constant 0 : i32
    %c0_i32_0 = arith.constant 0 : i32
    %c0_i32_1 = arith.constant 0 : i32
    return %c0_i32, %c0_i32_0 : i32, i32
  }
  func.func @transform_2(%arg0: i32) -> (i32, i32) {
    %c0_i32 = arith.constant 0 : i32
    %c0_i32_0 = arith.constant 0 : i32
    %c0_i32_1 = arith.constant 0 : i32
    return %c0_i32, %c0_i32_0 : i32, i32
  }
  func.func @transform_3(%arg0: i32) -> (i32, i32) {
    %c0_i32 = arith.constant 0 : i32
    %c0_i32_0 = arith.constant 0 : i32
    %c0_i32_1 = arith.constant 0 : i32
    return %c0_i32, %c0_i32_0 : i32, i32
  }
  func.func @transform_4(%arg0: i32) -> (i32, i32) {
    %c0_i32 = arith.constant 0 : i32
    %c0_i32_0 = arith.constant 0 : i32
    %c0_i32_1 = arith.constant 0 : i32
    return %c0_i32, %c0_i32_0 : i32, i32
  }
  func.func @transform_5(%arg0: i32) -> (i32, i32) {
    %c0_i32 = arith.constant 0 : i32
    %c0_i32_0 = arith.constant 0 : i32
    %c0_i32_1 = arith.constant 0 : i32
    return %c0_i32, %c0_i32_0 : i32, i32
  }
  func.func @transform_6(%arg0: i32) -> (i32, i32) {
    %c0_i32 = arith.constant 0 : i32
    %c0_i32_0 = arith.constant 0 : i32
    %c0_i32_1 = arith.constant 0 : i32
    return %c0_i32, %c0_i32_0 : i32, i32
  }
  func.func @transform_7(%arg0: i32) -> (i32, i32) {
    %c0_i32 = arith.constant 0 : i32
    %c0_i32_0 = arith.constant 0 : i32
    return %arg0, %c0_i32 : i32, i32
  }
}

</mosaic_0001>

<bundles_post_ra>
// kernel: tpu_custom_call.1
= control target key start
LH: loop header
LB: loop body
LE: loop exit
PB: predicated region body
PF: predicated region fallthrough
CT: control target
= control target key end

     0   :  { %12 = vsyncpa [#allocation3], 0  ;;  %s3025_s0 = inlined_call_operand.hbm [shape: f32[16,32], index: 0, kind: input, shape index: {}]   ;;  %s3026_s1 = inlined_call_operand.hbm [shape: bf16[32,512], index: 1, kind: input, shape index: {}]   ;;  %s3027_s2 = inlined_call_operand.vmem [shape: f32[1,512], index: 2, kind: input, shape index: {}]   ;;  %s3028_s3 = inlined_call_operand.hbm [shape: bf16[512,512], index: 3, kind: input, shape index: {}]   ;;  %s3029_s4 = inlined_call_operand.vmem [shape: f32[1,512], index: 4, kind: input, shape index: {}]   ;;  %s3030_s5 = inlined_call_operand.hbm [shape: bf16[512,128], index: 5, kind: input, shape index: {}]   ;;  %s3031_s6 = inlined_call_operand.vmem [shape: f32[1,128], index: 6, kind: input, shape index: {}]   ;;  %s3032_s7 = inlined_call_operand.hbm [shape: f32[16,128], index: 7, kind: output, shape index: {}]  }
   0x1   :  { %14 = vsyncpa [#allocation3 + $0x1], 0 }
   0x2   :  { %15 = vsyncpa [#allocation6], 0 }
   0x3   :  { %16 = vsyncpa [#allocation9], 0 }
   0x4   :  { %17 = vsyncpa [#allocation4], 0 }
   0x5   :  { %19 = vsyncpa [#allocation4 + $0x1], 0  ;;  %s2727_s24 = smov 0   ;;  %s2729_s25 = smov 0  }
   0x6   :  { %s2731_s26 = smov 0   ;;  %s2733_s27 = smov 0  }
   0x7 LB: > { %s2748_s28 = sadd.s32 4294967295, %s2675_s27   ;;  %s1924_s29 = sadd.s32 4294967294, %s2675_s27   ;;  %s2675_s27 = sphi %s2733_s27, %s3058_s27   ;;  %s2671_s26 = sphi %s2731_s26, %s3057_s26   ;;  %s2667_s25 = sphi %s2729_s25, %s3056_s25   ;;  %s2663_s24 = sphi %s2727_s24, %s3055_s24  }
   0x8   : > { %p45_p0 = scmp.ne.s32.totalorder %s2667_s25, %s2663_s24  ;;  %p3033_p1 = scmp.eq.s32.totalorder %s2748_s28, 0 }
   0x9   : > { %p201_p3 = scmp.eq.s32.totalorder %s1924_s29, 1  ;;  %p1925_p5 = scmp.ge.s32.totalorder %s2675_s27, 1 }
   0xa   : > { %p2757_p4 = por %p3033_p1, %p45_p0  ;;  %p208_p7 = scmp.lt.s32.totalorder %s2675_s27, 3 }
   0xb   : > { %p2762_p6 = por %p201_p3, %p45_p0  ;;  %s2677_s10 = smov [#allocation5]  }
   0xc   : > { %s3037_s30 = scalar_select %p2757_p4, 1, 0 }
   0xd   : > { %s3038_s8 = scalar_select %p2762_p6, 1, 0 }
   0xe   : > { %p2767_p8 = pnand %p1925_p5, %p208_p7  ;;  %s220_s11 = sshll.u32 %s2677_s10, 4  ;;  %s2771_s11 = int_to_ptr.vmem [resolvable:$true] %s220_s11 }
   0xf   : > { %3039 = sst [smem:[#allocation15_spill]] %s3038_s8  ;;  %s2678_s13 = smov [#allocation7]  }
  0x10   : > { %s3040_s9 = scalar_select %p2767_p8, 1, 0 }
  0x11   : > { %p2185_p9 = pneg %p2767_p8  ;;  %s236_s14 = sshll.u32 %s2678_s13, 4  ;;  %s2782_s14 = int_to_ptr.vmem [resolvable:$true] %s236_s14 }
  0x12   : > { %s2679_s15 = smov [#allocation8]   ;;  %s2487_s19 = scalar_lea.hbm %s3026_s1, 1024 }
  0x13   : > { %p2778_p11 = pnand %p2185_p9, %p3033_p1  ;;  %s2784_s16 = sshll.u32 %s2679_s15, 4  ;;  %s253_s16 = int_to_ptr.vmem [resolvable:$true] %s2784_s16 }
  0x14   : > { %p2488_p12 = scmp.ne.s32.totalorder %s3026_s1, %s2487_s19  ;;  %p2494_p5 = scmp.lt.u32.totalorder %s2487_s19, %s3026_s1 }
  0x15   : > { %p2794_p13 = pneg %p2778_p11 }
  0x17   : > { %p2490_p0 = pnand %p2794_p13, %p2488_p12 }
  0x19   : > { %p2491_p3 = pneg %p2490_p0 }
  0x1b   : > { %p2496_p7 = pnand %p2494_p5, %p2491_p3 }
  0x1d   : > { %2499 = shalt.err (!%p2496_p7)
}
  0x1e   : > { %s2500_s10 = scalar_lea.vmem %s2771_s11, 1024  ;;  %p2508_p2 = scmp.lt.s32.totalorder %s2771_s11, %s2771_s11 }
  0x1f   : > { %p2501_p9 = scmp.ne.s32.totalorder %s2771_s11, %s2500_s10  ;;  %p2509_p6 = scmp.lt.s32.totalorder %s2500_s10, %s2500_s10 }
  0x21   : > { %p2503_p10 = pnand %p2501_p9, %p2794_p13  ;;  %p2510_p12 = por %p2509_p6, %p2508_p2 }
  0x23   : > { %p2504_p1 = pneg %p2503_p10 }
  0x25   : > { %p2511_p0 = pnand %p2510_p12, %p2504_p1 }
  0x27   : > { %2514 = shalt.err (!%p2511_p0)
}
  0x28   : > { %s2680_s13 = smov 256   ;;  %s2681_s15 = smov 16  }
  0x29   : > { %2188 = dma.hbm_to_vmem [thread:$0]  (!%p2778_p11), %s3026_s1, 1024, %s2771_s11, [#allocation6], %s2680_s13, %s2680_s13, %s2681_s15  }
  0x2a   : > { %s2515_s21 = scalar_lea.hbm %s3028_s3, 16384 }
  0x2b   : > { %p2516_p2 = scmp.ne.s32.totalorder %s3028_s3, %s2515_s21  ;;  %p2522_p10 = scmp.lt.u32.totalorder %s2515_s21, %s3028_s3 }
  0x2d   : > { %p2518_p1 = pnand %p2516_p2, %p2794_p13 }
  0x2f   : > { %p2519_p6 = pneg %p2518_p1 }
  0x31   : > { %p2524_p3 = pnand %p2522_p10, %p2519_p6 }
  0x33   : > { %2527 = shalt.err (!%p2524_p3)
}
  0x34   : > { %s2528_s11 = scalar_lea.vmem %s2782_s14, 16384  ;;  %p2536_p12 = scmp.lt.s32.totalorder %s2782_s14, %s2782_s14 }
  0x35   : > { %p2529_p5 = scmp.ne.s32.totalorder %s2782_s14, %s2528_s11  ;;  %p2537_p0 = scmp.lt.s32.totalorder %s2528_s11, %s2528_s11 }
  0x37   : > { %p2531_p7 = pnand %p2529_p5, %p2794_p13  ;;  %p2538_p2 = por %p2537_p0, %p2536_p12 }
  0x39   : > { %p2532_p9 = pneg %p2531_p7 }
  0x3b   : > { %p2539_p1 = pnand %p2538_p2, %p2532_p9 }
  0x3d   : > { %2542 = shalt.err (!%p2539_p1)
}
  0x3e   : > { %2191 = dma.hbm_to_vmem [thread:$0]  (!%p2778_p11), %s3028_s3, 16384, %s2782_s14, [#allocation6], %s2680_s13, %s2680_s13, %s2681_s15  }
  0x3f   : > { %s2543_s20 = scalar_lea.hbm %s3030_s5, 4096 }
  0x40   : > { %p2544_p6 = scmp.ne.s32.totalorder %s3030_s5, %s2543_s20  ;;  %p2550_p5 = scmp.lt.u32.totalorder %s2543_s20, %s3030_s5 }
  0x42   : > { %p2546_p10 = pnand %p2544_p6, %p2794_p13 }
  0x44   : > { %p2547_p3 = pneg %p2546_p10 }
  0x46   : > { %p2552_p7 = pnand %p2550_p5, %p2547_p3 }
  0x48   : > { %2555 = shalt.err (!%p2552_p7)
}
  0x49   : > { %s2556_s11 = scalar_lea.vmem %s253_s16, 4096  ;;  %p2564_p2 = scmp.lt.s32.totalorder %s253_s16, %s253_s16 }
  0x4a   : > { %p2557_p9 = scmp.ne.s32.totalorder %s253_s16, %s2556_s11  ;;  %p2565_p1 = scmp.lt.s32.totalorder %s2556_s11, %s2556_s11 }
  0x4c   : > { %p2559_p12 = pnand %p2557_p9, %p2794_p13  ;;  %p2566_p4 = por %p2565_p1, %p2564_p2 }
  0x4e   : > { %p2560_p0 = pneg %p2559_p12 }
  0x50   : > { %p2567_p8 = pnand %p2566_p4, %p2560_p0 }
  0x52   : > { %2570 = shalt.err (!%p2567_p8)
}
  0x53   : > { %s2682_s14 = smov 64   ;;  %s2683_s22 = smov 4  }
  0x54   : > { %2194 = dma.hbm_to_vmem [thread:$0]  (!%p2778_p11), %s3030_s5, 4096, %s253_s16, [#allocation9], %s2682_s14, %s2682_s14, %s2683_s22  }
  0x55   : > { %s2858_s8 = sadd.s32 1, %s2675_s27   ;;  %s32_s18 = sadd.s32 1, %s2671_s26 }
  0x56   : > { %s29_s17 = ssub.s32 %s2675_s27, %s2858_s8  ;;  %p39_p8 = scmp.ne.s32.totalorder %s2671_s26, %s2667_s25 }
  0x57   : > { %p30_p4 = scmp.eq.s32.totalorder %s29_s17, 0  ;;  %p40_p13 = scmp.eq.s32.totalorder %s2675_s27, 0 }
  0x58   : > { %p2206_p6 = scmp.lt.s32.totalorder %s2675_s27, 2  ;;  %p3043_p3 = scmp.eq.s32.totalorder %s2748_s28, 1 }
  0x59   : > { %s2868_s19 = scalar_select %p30_p4, %s2671_s26, %s32_s18  }
  0x5a   : > { %p41_p10 = por %p40_p13, %p39_p8  ;;  %p2872_p5 = por %p3043_p3, %p39_p8 }
  0x5b   : > { %s269_s12 = sand.u32 1, %s2671_s26   ;;  %s1931_s21 = sshll.u32 %s2675_s27, 7 }
  0x5c   : > { %s1930_s16 = sshll.u32 %s269_s12, 3  ;;  %s2881_s10 = scalar_lea.hbm %s3025_s0, %s1931_s21 }
  0x5d   : > { %s273_s11 = scalar_lea.vmem [#allocation2], %s1930_s16  ;;  %p2883_p11 = pnand %p2206_p6, %p41_p10 }
  0x5e   : > { %s280_s14 = sshll.u32 %s273_s11, 4  ;;  %s270_s13 = scalar_lea.sflag [#allocation3], %s269_s12  ;;  %s2887_s14 = int_to_ptr.vmem [resolvable:$true] %s280_s14 }
  0x5f   : > { %s2571_s15 = scalar_lea.hbm %s2881_s10, 128  ;;  %p2573_p9 = pneg %p2883_p11 }
  0x60   : > { %p2572_p7 = scmp.ne.s32.totalorder %s2881_s10, %s2571_s15  ;;  %s2576_s21 = scalar_lea.hbm %s3025_s0, 256 }
  0x61   : > { %p2577_p2 = scmp.lt.u32.totalorder %s2881_s10, %s3025_s0  ;;  %p2578_p1 = scmp.lt.u32.totalorder %s2576_s21, %s2571_s15 }
  0x62   : > { %p2574_p12 = pnand %p2573_p9, %p2572_p7  ;;  %p2580_p8 = scmp.lt.u32.totalorder %s2571_s15, %s2881_s10 }
  0x63   : > { %p2579_p4 = por %p2578_p1, %p2577_p2 }
  0x64   : > { %p2575_p0 = pneg %p2574_p12 }
  0x65   : > { %p2581_p13 = por %p2580_p8, %p2579_p4 }
  0x67   : > { %p2582_p6 = pnand %p2581_p13, %p2575_p0 }
  0x69   : > { %2585 = shalt.err (!%p2582_p6)
}
  0x6a   : > { %s2586_s12 = scalar_lea.vmem %s2887_s14, 128  ;;  %s2684_s29 = smov [#allocation2]  }
  0x6b   : > { %p2587_p10 = scmp.ne.s32.totalorder %s2887_s14, %s2586_s12  ;;  %s2591_s11 = sshll.u32 %s2684_s29, 4  ;;  %s2592_s11 = int_to_ptr.vmem [resolvable:$false] %s2591_s11 }
  0x6c   : > { %s2593_s17 = scalar_lea.vmem %s2592_s11, 256  ;;  %p2594_p12 = scmp.lt.s32.totalorder %s2887_s14, %s2592_s11 }
  0x6d   : > { %p2589_p3 = pnand %p2587_p10, %p2573_p9  ;;  %p2595_p2 = scmp.lt.s32.totalorder %s2593_s17, %s2586_s12 }
  0x6f   : > { %p2590_p7 = pneg %p2589_p3  ;;  %p2596_p1 = por %p2595_p2, %p2594_p12 }
  0x71   : > { %p2597_p4 = pnand %p2596_p1, %p2590_p7 }
  0x73   : > { %2600 = shalt.err (!%p2597_p4)
}
  0x74   : > { %2198 = dma.hbm_to_vmem [thread:$0]  (!%p2883_p11), %s2881_s10, 128, %s2887_s14, %s270_s13  }
  0x75   : > { %p3046_p0 = scmp.ne.s32.totalorder %s3040_s9, 0 }
  0x76   : > { %s2917_s15 = sand.u32 (!%p3046_p0), 1, %s2667_s25   ;;  %p3047_p9 = scmp.ne.s32.totalorder (!%p3046_p0), %s3037_s30, 0 }
  0x77   : > { %289 = sbr.rel (%p3046_p0) target bundleno = 881 (0x371), region = 48  ;;  %s1933_s18 = sshll.u32 (!%p3046_p0), %s2917_s15, 3 }
  0x78   : > { %s292_s21 = scalar_lea.sflag (!%p3046_p0), [#allocation3], %s2917_s15  ;;  %s295_s16 = scalar_lea.vmem (!%p3046_p0), [#allocation2], %s1933_s18 }
  0x7e   : > { %2646 = dma.done.wait (%p3047_p9), %s292_s21, 128  }
  0x7f   : > { %2648 = vsyncadd (%p3047_p9), %s292_s21, 4294967168  ;;  %p3048_p11 = scmp.eq.s32.totalorder %s2748_s28, 0 }
  0x81   : > { %2650 = dma.done.wait (%p3048_p11), [#allocation6], 17408   ;;  %p3049_p8 = pmov %p3048_p11 }
  0x83   : > { %2652 = vsyncadd (%p3049_p8), [#allocation6], 4294949888  ;;  %p3050_p13 = pmov %p3049_p8 }
  0x84   : > { %p3051_p6 = pmov %p3049_p8 }
  0x85   : > { %2654 = dma.done.wait (%p3050_p13), [#allocation9], 4096  }
  0x86   : > { %2656 = vsyncadd (%p3051_p6), [#allocation9], 4294963200  ;;  %v2685_v0 = vmov 0   ;;  %v2251_v1 = vld [vmem:[#allocation5 + $0x4] ss:$16 sps:$4 sm:$0xff]   ;;  %vm411_vm0 = vcmask 261120  }
  0x87   : > { %447 = vmatprep.mubr.bf16.mxu0 %v2685_v0  ;;  %488 = vmatprep.mubr.bf16.mxu1 %v2685_v0  ;;  %v2253_v2 = vld [vmem:[#allocation5] ss:$16 sps:$4 sm:$0xff]   ;;  %v2254_v3 = vld [vmem:[#allocation5 + $0x24] ss:$16 sps:$4 sm:$0xff]   ;;  %v2257_v6 = vld [vmem:[#allocation5 + $0xc] ss:$16 sps:$4 sm:$0xff]  }
  0x88   : > { %415 = vmatprep.subr.bf16.mxu0 %v2251_v1  ;;  %v2256_v4 = vld [vmem:[#allocation5 + $0x20] ss:$16 sps:$4 sm:$0xff]   ;;  %v2259_v7 = vld [vmem:[#allocation5 + $0x8] ss:$16 sps:$4 sm:$0xff]   ;;  %456 = vmatprep.subr.bf16.mxu1 %v2257_v6  ;;  %v2260_v8 = vld [vmem:[#allocation5 + $0x2c] ss:$16 sps:$4 sm:$0xff]  }
  0x89   : > { %v339_v5 = vld [vmem:[%s295_s16] sm:$0xff]  ;;  %416 = vmatpush1.bf16.msra.mxu0 %v2253_v2  ;;  %457 = vmatpush1.bf16.msra.mxu1 %v2259_v7  ;;  %s2110_s23 = sshll.u32 %s2748_s28, 7  ;;  %s337_s12 = scalar_lea.vmem [#allocation10], %s1933_s18 }
  0x8a   : > { %417 = vmatprep.subr.bf16.mxu0 %v2254_v3  ;;  %v340_v9 = vpack.c.bf16 %v339_v5, %v339_v5  ;;  %v2262_v10 = vld [vmem:[#allocation5 + $0x28] ss:$16 sps:$4 sm:$0xff]   ;;  %v2265_v11 = vld [vmem:[#allocation7 + $0x4] ss:$16 sps:$4 sm:$0xff]   ;;  %458 = vmatprep.subr.bf16.mxu1 %v2260_v8  ;;  %v2263_v12 = vld [vmem:[#allocation7] ss:$16 sps:$4 sm:$0xff]   ;;  %s2981_s21 = scalar_lea.hbm %s3032_s7, %s2110_s23 }
  0x8b   : > { %v2268_v13 = vld [vmem:[#allocation7 + $0xc] ss:$16 sps:$4 sm:$0xff]   ;;  %v2271_v14 = vld [vmem:[#allocation7 + $0x24] ss:$16 sps:$4 sm:$0xff]   ;;  %v2266_v15 = vld [vmem:[#allocation7 + $0x8] ss:$16 sps:$4 sm:$0xff]  }
  0x8c   : > { %v2269_v16 = vld [vmem:[#allocation7 + $0x20] ss:$16 sps:$4 sm:$0xff]   ;;  %v2274_v17 = vld [vmem:[#allocation7 + $0x2c] ss:$16 sps:$4 sm:$0xff]   ;;  %v2277_v18 = vld [vmem:[#allocation7 + $0x44] ss:$16 sps:$4 sm:$0xff]  }
  0x8d   : > { %418 = vmatpush1.bf16.msra.mxu0 %v2256_v4  ;;  %459 = vmatpush1.bf16.msra.mxu1 %v2262_v10  ;;  %v2272_v19 = vld [vmem:[#allocation7 + $0x28] ss:$16 sps:$4 sm:$0xff]   ;;  %v2275_v20 = vld [vmem:[#allocation7 + $0x40] ss:$16 sps:$4 sm:$0xff]   ;;  %v2280_v21 = vld [vmem:[#allocation7 + $0x4c] ss:$16 sps:$4 sm:$0xff]  }
  0x8e   : > { %1295 = vmatprep.subr.bf16.mxu0 %v2265_v11  ;;  %1377 = vmatprep.subr.bf16.mxu1 %v2268_v13  ;;  %v2283_v22 = vld [vmem:[#allocation7 + $0x64] ss:$16 sps:$4 sm:$0xff]   ;;  %v2278_v23 = vld [vmem:[#allocation7 + $0x48] ss:$16 sps:$4 sm:$0xff]   ;;  %v2281_v24 = vld [vmem:[#allocation7 + $0x60] ss:$16 sps:$4 sm:$0xff]   ;;  %v351_v13 = vlaneseq }
  0x8f   : > { %v2286_v25 = vld [vmem:[#allocation7 + $0x6c] ss:$16 sps:$4 sm:$0xff]   ;;  %v2289_v26 = vld [vmem:[#allocation7 + $0x84] ss:$16 sps:$4 sm:$0xff]   ;;  %v2284_v27 = vld [vmem:[#allocation7 + $0x68] ss:$16 sps:$4 sm:$0xff]  }
  0x90   : > { %1946 = vmatmul.mubr.msk.bf16.vlgmr.msra.gmra.mrb[0].mxu0 %vm411_vm0, %v340_v9  ;;  %1947 = vmatmul.mubr.msk.bf16.vlgmr.msra.gmra.mrb[0].mxu1 %vm411_vm0, %v340_v9  ;;  %v2287_v28 = vld [vmem:[#allocation7 + $0x80] ss:$16 sps:$4 sm:$0xff]   ;;  %v2292_v29 = vld [vmem:[#allocation7 + $0x8c] ss:$16 sps:$4 sm:$0xff]   ;;  %v2295_v30 = vld [vmem:[#allocation7 + $0xa4] ss:$16 sps:$4 sm:$0xff]  }
  0x91   : > { %1296 = vmatpush1.bf16.msra.mxu0 %v2263_v12  ;;  %1378 = vmatpush1.bf16.msra.mxu1 %v2266_v15  ;;  %v2290_v31 = vld [vmem:[#allocation7 + $0x88] ss:$16 sps:$4 sm:$0xff]   ;;  %v2293_v32 = vld [vmem:[#allocation7 + $0xa0] ss:$16 sps:$4 sm:$0xff]   ;;  %v2298_v33 = vld [vmem:[#allocation7 + $0xac] ss:$16 sps:$4 sm:$0xff]  }
  0x92   : > { %1297 = vmatprep.subr.bf16.mxu0 %v2271_v14  ;;  %1379 = vmatprep.subr.bf16.mxu1 %v2274_v17  ;;  %v2301_v34 = vld [vmem:[#allocation7 + $0xc4] ss:$16 sps:$4 sm:$0xff]   ;;  %v2296_v35 = vld [vmem:[#allocation7 + $0xa8] ss:$16 sps:$4 sm:$0xff]   ;;  %v2299_v36 = vld [vmem:[#allocation7 + $0xc0] ss:$16 sps:$4 sm:$0xff]  }
  0x93   : > { %v2304_v37 = vld [vmem:[#allocation7 + $0xcc] ss:$16 sps:$4 sm:$0xff]   ;;  %v2307_v38 = vld [vmem:[#allocation7 + $0xe4] ss:$16 sps:$4 sm:$0xff]   ;;  %v2302_v39 = vld [vmem:[#allocation7 + $0xc8] ss:$16 sps:$4 sm:$0xff]  }
  0x94   : > { %v2305_v40 = vld [vmem:[#allocation7 + $0xe0] ss:$16 sps:$4 sm:$0xff]   ;;  %v2310_v41 = vld [vmem:[#allocation7 + $0xec] ss:$16 sps:$4 sm:$0xff]   ;;  %v2313_v42 = vld [vmem:[#allocation7 + $0x104] ss:$16 sps:$4 sm:$0xff]  }
  0x95   : > { %1298 = vmatpush1.bf16.msra.mxu0 %v2269_v16  ;;  %1380 = vmatpush1.bf16.msra.mxu1 %v2272_v19  ;;  %v2308_v43 = vld [vmem:[#allocation7 + $0xe8] ss:$16 sps:$4 sm:$0xff]   ;;  %v2311_v44 = vld [vmem:[#allocation7 + $0x100] ss:$16 sps:$4 sm:$0xff]   ;;  %v2316_v45 = vld [vmem:[#allocation7 + $0x10c] ss:$16 sps:$4 sm:$0xff]  }
  0x96   : > { %1299 = vmatprep.subr.bf16.mxu0 %v2277_v18  ;;  %1381 = vmatprep.subr.bf16.mxu1 %v2280_v21  ;;  %v2319_v46 = vld [vmem:[#allocation7 + $0x124] ss:$16 sps:$4 sm:$0xff]   ;;  %v2314_v47 = vld [vmem:[#allocation7 + $0x108] ss:$16 sps:$4 sm:$0xff]   ;;  %v2317_v48 = vld [vmem:[#allocation7 + $0x120] ss:$16 sps:$4 sm:$0xff]  }
  0x97   : > { %v2322_v49 = vld [vmem:[#allocation7 + $0x12c] ss:$16 sps:$4 sm:$0xff]   ;;  %v2325_v50 = vld [vmem:[#allocation7 + $0x144] ss:$16 sps:$4 sm:$0xff]   ;;  %v2320_v51 = vld [vmem:[#allocation7 + $0x128] ss:$16 sps:$4 sm:$0xff]  }
  0x98   : > { %v2323_v52 = vld [vmem:[#allocation7 + $0x140] ss:$16 sps:$4 sm:$0xff]   ;;  %v2328_v53 = vld [vmem:[#allocation7 + $0x14c] ss:$16 sps:$4 sm:$0xff]   ;;  %v2331_v54 = vld [vmem:[#allocation7 + $0x164] ss:$16 sps:$4 sm:$0xff]  }
  0x99   : > { %1300 = vmatpush1.bf16.msra.mxu0 %v2275_v20  ;;  %1382 = vmatpush1.bf16.msra.mxu1 %v2278_v23  ;;  %v2326_v55 = vld [vmem:[#allocation7 + $0x148] ss:$16 sps:$4 sm:$0xff]   ;;  %v2329_v56 = vld [vmem:[#allocation7 + $0x160] ss:$16 sps:$4 sm:$0xff]   ;;  %v2334_v57 = vld [vmem:[#allocation7 + $0x16c] ss:$16 sps:$4 sm:$0xff]  }
  0x9a   : > { %1301 = vmatprep.subr.bf16.mxu0 %v2283_v22  ;;  %1383 = vmatprep.subr.bf16.mxu1 %v2286_v25  ;;  %v2337_v58 = vld [vmem:[#allocation7 + $0x184] ss:$16 sps:$4 sm:$0xff]   ;;  %v2332_v59 = vld [vmem:[#allocation7 + $0x168] ss:$16 sps:$4 sm:$0xff]   ;;  %v2335_v60 = vld [vmem:[#allocation7 + $0x180] ss:$16 sps:$4 sm:$0xff]  }
  0x9b   : > { %v2340_v61 = vld [vmem:[#allocation7 + $0x18c] ss:$16 sps:$4 sm:$0xff]   ;;  %v2343_v62 = vld [vmem:[#allocation7 + $0x1a4] ss:$16 sps:$4 sm:$0xff]   ;;  %v2338_v63 = vld [vmem:[#allocation7 + $0x188] ss:$16 sps:$4 sm:$0xff]  }
  0x9c   : > { %v2341_v0 = vld [vmem:[#allocation7 + $0x1a0] ss:$16 sps:$4 sm:$0xff]   ;;  %v2346_v1 = vld [vmem:[#allocation7 + $0x1ac] ss:$16 sps:$4 sm:$0xff]   ;;  %v2344_v2 = vld [vmem:[#allocation7 + $0x1a8] ss:$16 sps:$4 sm:$0xff]  }
  0x9d   : > { %1302 = vmatpush1.bf16.msra.mxu0 %v2281_v24  ;;  %1384 = vmatpush1.bf16.msra.mxu1 %v2284_v27  ;;  %v2349_v3 = vld [vmem:[#allocation7 + $0x1c4] ss:$16 sps:$4 sm:$0xff]   ;;  %v2352_v4 = vld [vmem:[#allocation7 + $0x1cc] ss:$16 sps:$4 sm:$0xff]   ;;  %v2347_v5 = vld [vmem:[#allocation7 + $0x1c0] ss:$16 sps:$4 sm:$0xff]  }
  0x9e   : > { %1303 = vmatprep.subr.bf16.mxu0 %v2289_v26  ;;  %1385 = vmatprep.subr.bf16.mxu1 %v2292_v29  ;;  %v2350_v6 = vld [vmem:[#allocation7 + $0x1c8] ss:$16 sps:$4 sm:$0xff]   ;;  %v2355_v7 = vld [vmem:[#allocation7 + $0x1e4] ss:$16 sps:$4 sm:$0xff]   ;;  %v2358_v8 = vld [vmem:[#allocation7 + $0x1ec] ss:$16 sps:$4 sm:$0xff]  }
  0x9f   : > { %v2353_v9 = vld [vmem:[#allocation7 + $0x1e0] ss:$16 sps:$4 sm:$0xff]   ;;  %v2356_v10 = vld [vmem:[#allocation7 + $0x1e8] ss:$16 sps:$4 sm:$0xff]   ;;  %v2361_v11 = vld [vmem:[#allocation7 + $0x204] ss:$16 sps:$4 sm:$0xff]  }
  0xa0   : > { %v2364_v12 = vld [vmem:[#allocation7 + $0x20c] ss:$16 sps:$4 sm:$0xff]   ;;  %v2935_v14 = vshrl.u32 %v351_v13, 7  ;;  %v2941_v16 = vld [vmem:[%s3027_s2] sm:$0xf]  ;;  %s1825_s29 = sshll.u32 %s337_s12, 4  ;;  %s2983_s29 = int_to_ptr.vmem [resolvable:$true] %s1825_s29 }
  0xa1   : > { %1304 = vmatpush1.bf16.msra.mxu0 %v2287_v28  ;;  %1386 = vmatpush1.bf16.msra.mxu1 %v2290_v31  ;;  %v2421_v13 = vld [vmem:[#allocation7 + $0x344] ss:$16 sps:$4 sm:$0xff]   ;;  %s1812_s16 = scalar_lea.sflag [#allocation4], %s2917_s15  ;;  %s2601_s30 = scalar_lea.vmem %s2983_s29, 128 }
  0xa2   : > { %1305 = vmatprep.subr.bf16.mxu0 %v2295_v30  ;;  %1387 = vmatprep.subr.bf16.mxu1 %v2298_v33  ;;  %v353_v15 = vsub.s32 0, %v2935_v14  ;;  %v357_v17 = vsub.s32 1, %v2935_v14  ;;  %v365_v19 = vsub.s32 3, %v2935_v14  ;;  %p2602_p10 = scmp.ne.s32.totalorder %s2983_s29, %s2601_s30  ;;  %s2686_s28 = smov [#allocation10]  }
  0xa3   : > { %s2605_s18 = sshll.u32 %s2686_s28, 4  ;;  %s2606_s18 = int_to_ptr.vmem [resolvable:$false] %s2605_s18 }
  0xa4   : > { %v354_v18 = vrot.slane %v2941_v16, %v353_v15  ;;  %v358_v20 = vrot.slane %v2941_v16, %v357_v17  ;;  %v366_v24 = vrot.slane %v2941_v16, %v365_v19  ;;  %p2603_p3 = pnand %p2602_p10, %p2872_p5  ;;  %s2607_s9 = scalar_lea.vmem %s2606_s18, 256 }
  0xa5   : > { %1306 = vmatpush1.bf16.msra.mxu0 %v2293_v32  ;;  %1388 = vmatpush1.bf16.msra.mxu1 %v2296_v35  ;;  %v2359_v35 = vld [vmem:[#allocation7 + $0x200] ss:$16 sps:$4 sm:$0xff]   ;;  %p2608_p12 = scmp.lt.s32.totalorder %s2983_s29, %s2606_s18  ;;  %p2609_p2 = scmp.lt.s32.totalorder %s2607_s9, %s2601_s30 }
  0xa6   : > { %1307 = vmatprep.subr.bf16.mxu0 %v2301_v34  ;;  %1389 = vmatprep.subr.bf16.mxu1 %v2304_v37  ;;  %p2604_p7 = pneg %p2603_p3 }
  0xa7   : > { %p2610_p1 = por %p2609_p2, %p2608_p12 }
  0xa9   : > { %1308 = vmatpush1.bf16.msra.mxu0 %v2299_v36  ;;  %1390 = vmatpush1.bf16.msra.mxu1 %v2302_v39  ;;  %v2362_v36 = vld [vmem:[#allocation7 + $0x208] ss:$16 sps:$4 sm:$0xff]   ;;  %v2367_v39 = vld [vmem:[#allocation7 + $0x224] ss:$16 sps:$4 sm:$0xff]   ;;  %p2611_p4 = pnand %p2610_p1, %p2604_p7 }
  0xaa   : > { %1309 = vmatprep.subr.bf16.mxu0 %v2307_v38  ;;  %1391 = vmatprep.subr.bf16.mxu1 %v2310_v41 }
  0xad   : > { %1310 = vmatpush1.bf16.msra.mxu0 %v2305_v40  ;;  %1392 = vmatpush1.bf16.msra.mxu1 %v2308_v43  ;;  %v2370_v40 = vld [vmem:[#allocation7 + $0x22c] ss:$16 sps:$4 sm:$0xff]   ;;  %v2365_v43 = vld [vmem:[#allocation7 + $0x220] ss:$16 sps:$4 sm:$0xff]  }
  0xae   : > { %1311 = vmatprep.subr.bf16.mxu0 %v2313_v42  ;;  %1393 = vmatprep.subr.bf16.mxu1 %v2316_v45  ;;  %v2373_v45 = vld [vmem:[#allocation7 + $0x244] ss:$16 sps:$4 sm:$0xff]  }
  0xb1   : > { %1312 = vmatpush1.bf16.msra.mxu0 %v2311_v44  ;;  %1394 = vmatpush1.bf16.msra.mxu1 %v2314_v47  ;;  %v2368_v44 = vld [vmem:[#allocation7 + $0x228] ss:$16 sps:$4 sm:$0xff]   ;;  %v2371_v47 = vld [vmem:[#allocation7 + $0x240] ss:$16 sps:$4 sm:$0xff]  }
  0xb2   : > { %1313 = vmatprep.subr.bf16.mxu0 %v2319_v46  ;;  %1395 = vmatprep.subr.bf16.mxu1 %v2322_v49  ;;  %v2376_v46 = vld [vmem:[#allocation7 + $0x24c] ss:$16 sps:$4 sm:$0xff]   ;;  %v2379_v49 = vld [vmem:[#allocation7 + $0x264] ss:$16 sps:$4 sm:$0xff]  }
  0xb5   : > { %1314 = vmatpush1.bf16.msra.mxu0 %v2317_v48  ;;  %1396 = vmatpush1.bf16.msra.mxu1 %v2320_v51  ;;  %v2374_v48 = vld [vmem:[#allocation7 + $0x248] ss:$16 sps:$4 sm:$0xff]   ;;  %v2377_v51 = vld [vmem:[#allocation7 + $0x260] ss:$16 sps:$4 sm:$0xff]  }
  0xb6   : > { %1315 = vmatprep.subr.bf16.mxu0 %v2325_v50  ;;  %1397 = vmatprep.subr.bf16.mxu1 %v2328_v53  ;;  %v2382_v50 = vld [vmem:[#allocation7 + $0x26c] ss:$16 sps:$4 sm:$0xff]   ;;  %v2385_v53 = vld [vmem:[#allocation7 + $0x284] ss:$16 sps:$4 sm:$0xff]  }
  0xb9   : > { %1316 = vmatpush1.bf16.msra.mxu0 %v2323_v52  ;;  %1398 = vmatpush1.bf16.msra.mxu1 %v2326_v55  ;;  %v2380_v52 = vld [vmem:[#allocation7 + $0x268] ss:$16 sps:$4 sm:$0xff]   ;;  %v2383_v55 = vld [vmem:[#allocation7 + $0x280] ss:$16 sps:$4 sm:$0xff]  }
  0xba   : > { %1317 = vmatprep.subr.bf16.mxu0 %v2331_v54  ;;  %1399 = vmatprep.subr.bf16.mxu1 %v2334_v57  ;;  %v2388_v54 = vld [vmem:[#allocation7 + $0x28c] ss:$16 sps:$4 sm:$0xff]   ;;  %v2391_v57 = vld [vmem:[#allocation7 + $0x2a4] ss:$16 sps:$4 sm:$0xff]  }
  0xbd   : > { %1318 = vmatpush1.bf16.msra.mxu0 %v2329_v56  ;;  %1400 = vmatpush1.bf16.msra.mxu1 %v2332_v59  ;;  %v2386_v56 = vld [vmem:[#allocation7 + $0x288] ss:$16 sps:$4 sm:$0xff]   ;;  %v2389_v59 = vld [vmem:[#allocation7 + $0x2a0] ss:$16 sps:$4 sm:$0xff]  }
  0xbe   : > { %1319 = vmatprep.subr.bf16.mxu0 %v2337_v58  ;;  %1401 = vmatprep.subr.bf16.mxu1 %v2340_v61  ;;  %v2394_v58 = vld [vmem:[#allocation7 + $0x2ac] ss:$16 sps:$4 sm:$0xff]   ;;  %v2397_v61 = vld [vmem:[#allocation7 + $0x2c4] ss:$16 sps:$4 sm:$0xff]  }
  0xc1   : > { %1320 = vmatpush1.bf16.msra.mxu0 %v2335_v60  ;;  %1402 = vmatpush1.bf16.msra.mxu1 %v2338_v63  ;;  %v2392_v60 = vld [vmem:[#allocation7 + $0x2a8] ss:$16 sps:$4 sm:$0xff]   ;;  %v2395_v63 = vld [vmem:[#allocation7 + $0x2c0] ss:$16 sps:$4 sm:$0xff]  }
  0xc2   : > { %1321 = vmatprep.subr.bf16.mxu0 %v2343_v62  ;;  %1403 = vmatprep.subr.bf16.mxu1 %v2346_v1  ;;  %v2400_v62 = vld [vmem:[#allocation7 + $0x2cc] ss:$16 sps:$4 sm:$0xff]   ;;  %v2403_v1 = vld [vmem:[#allocation7 + $0x2e4] ss:$16 sps:$4 sm:$0xff]  }
  0xc5   : > { %1322 = vmatpush1.bf16.msra.mxu0 %v2341_v0  ;;  %1404 = vmatpush1.bf16.msra.mxu1 %v2344_v2  ;;  %v2398_v0 = vld [vmem:[#allocation7 + $0x2c8] ss:$16 sps:$4 sm:$0xff]   ;;  %v2406_v2 = vld [vmem:[#allocation7 + $0x2ec] ss:$16 sps:$4 sm:$0xff]  }
  0xc6   : > { %1323 = vmatprep.subr.bf16.mxu0 %v2349_v3  ;;  %1405 = vmatprep.subr.bf16.mxu1 %v2352_v4  ;;  %v2401_v3 = vld [vmem:[#allocation7 + $0x2e0] ss:$16 sps:$4 sm:$0xff]   ;;  %v2404_v4 = vld [vmem:[#allocation7 + $0x2e8] ss:$16 sps:$4 sm:$0xff]  }
  0xc9   : > { %1324 = vmatpush1.bf16.msra.mxu0 %v2347_v5  ;;  %1406 = vmatpush1.bf16.msra.mxu1 %v2350_v6  ;;  %v2409_v5 = vld [vmem:[#allocation7 + $0x304] ss:$16 sps:$4 sm:$0xff]   ;;  %v2412_v6 = vld [vmem:[#allocation7 + $0x30c] ss:$16 sps:$4 sm:$0xff]  }
  0xca   : > { %1325 = vmatprep.subr.bf16.mxu0 %v2355_v7  ;;  %1407 = vmatprep.subr.bf16.mxu1 %v2358_v8  ;;  %v2407_v7 = vld [vmem:[#allocation7 + $0x300] ss:$16 sps:$4 sm:$0xff]   ;;  %v2410_v8 = vld [vmem:[#allocation7 + $0x308] ss:$16 sps:$4 sm:$0xff]  }
  0xcd   : > { %1326 = vmatpush1.bf16.msra.mxu0 %v2353_v9  ;;  %1408 = vmatpush1.bf16.msra.mxu1 %v2356_v10  ;;  %v2415_v9 = vld [vmem:[#allocation7 + $0x324] ss:$16 sps:$4 sm:$0xff]   ;;  %v2418_v10 = vld [vmem:[#allocation7 + $0x32c] ss:$16 sps:$4 sm:$0xff]  }
  0xce   : > { %1336 = vmatprep.subr.bf16.mxu0 %v2361_v11  ;;  %1418 = vmatprep.subr.bf16.mxu1 %v2364_v12  ;;  %v2413_v11 = vld [vmem:[#allocation7 + $0x320] ss:$16 sps:$4 sm:$0xff]   ;;  %v2416_v12 = vld [vmem:[#allocation7 + $0x328] ss:$16 sps:$4 sm:$0xff]  }
 0x163   : > { %v449_v21 = vpop.f32.mrb[0].mxu0  ;;  %v2954_v29 = vpop.f32.mrb[0].mxu1 }
 0x164   : > { %v450_v22 = vadd.f32 %v449_v21, %v354_v18  ;;  %v451_v23 = vpop.f32.mrb[1].mxu0  ;;  %v492_v31 = vpop.f32.mrb[1].mxu1  ;;  %v2424_v18 = vld [vmem:[#allocation7 + $0x34c] ss:$16 sps:$4 sm:$0xff]   ;;  %v2422_v21 = vld [vmem:[#allocation7 + $0x348] ss:$16 sps:$4 sm:$0xff]  }
 0x165   : > { %v452_v25 = vadd.f32 %v451_v23, %v358_v20  ;;  %v453_v26 = vpop.f32.mrb[2].mxu0  ;;  %v493_v32 = vadd.f32 %v492_v31, %v366_v24  ;;  %v494_v33 = vpop.f32.mrb[2].mxu1  ;;  %v2419_v20 = vld [vmem:[#allocation7 + $0x340] ss:$16 sps:$4 sm:$0xff]   ;;  %v2430_v23 = vld [vmem:[#allocation7 + $0x36c] ss:$16 sps:$4 sm:$0xff]  }
 0x166   : > { %v497_v27 = vmax.f32 %v450_v22, 0.0  ;;  %v454_v28 = vpop.f32.mrb[3].mxu0  ;;  %v495_v37 = vpop.f32.mrb[3].mxu1  ;;  %v2427_v22 = vld [vmem:[#allocation7 + $0x364] ss:$16 sps:$4 sm:$0xff]   ;;  %v361_v31 = vsub.s32 2, %v2935_v14 }
 0x167   : > { %v498_v30 = vmax.f32 %v452_v25, 0.0  ;;  %v500_v41 = vmax.f32 %v493_v32, 0.0  ;;  %v2425_v24 = vld [vmem:[#allocation7 + $0x360] ss:$16 sps:$4 sm:$0xff]   ;;  %v2428_v25 = vld [vmem:[#allocation7 + $0x368] ss:$16 sps:$4 sm:$0xff]  }
 0x168   : > { %v501_v38 = vpack.c.bf16 %v497_v27, %v497_v27  ;;  %v2433_v26 = vld [vmem:[#allocation7 + $0x384] ss:$16 sps:$4 sm:$0xff]   ;;  %v2436_v27 = vld [vmem:[#allocation7 + $0x38c] ss:$16 sps:$4 sm:$0xff]   ;;  %v2431_v28 = vld [vmem:[#allocation7 + $0x380] ss:$16 sps:$4 sm:$0xff]  }
 0x169   : > { %v502_v34 = vpack.c.bf16 %v498_v30, %v498_v30  ;;  %v504_v42 = vpack.c.bf16 %v500_v41, %v500_v41  ;;  %v2434_v30 = vld [vmem:[#allocation7 + $0x388] ss:$16 sps:$4 sm:$0xff]   ;;  %v2439_v32 = vld [vmem:[#allocation7 + $0x3a4] ss:$16 sps:$4 sm:$0xff]   ;;  %v2442_v33 = vld [vmem:[#allocation7 + $0x3ac] ss:$16 sps:$4 sm:$0xff]  }
 0x16a   : > { %v2445_v37 = vld [vmem:[#allocation7 + $0x3c4] ss:$16 sps:$4 sm:$0xff]  }
 0x16b   : > { %1327 = vmatprep.mubr.bf16.mxu0 %v502_v34  ;;  %1409 = vmatprep.mubr.bf16.mxu1 %v502_v34  ;;  %v2437_v34 = vld [vmem:[#allocation7 + $0x3a0] ss:$16 sps:$4 sm:$0xff]  }
 0x16c   : > { %1328 = vmatmul.mubr.bf16.vlgmr.msra.gmra.mrb[4].mxu0 %v501_v38  ;;  %1410 = vmatmul.mubr.bf16.vlgmr.msra.gmra.mrb[4].mxu1 %v501_v38  ;;  %v2448_v38 = vld [vmem:[#allocation7 + $0x3cc] ss:$16 sps:$4 sm:$0xff]  }
 0x16d   : > { %1337 = vmatpush1.bf16.msra.mxu0 %v2359_v35  ;;  %1419 = vmatpush1.bf16.msra.mxu1 %v2362_v36  ;;  %v2440_v35 = vld [vmem:[#allocation7 + $0x3a8] ss:$16 sps:$4 sm:$0xff]   ;;  %v362_v36 = vrot.slane %v2941_v16, %v361_v31  ;;  %v2455_v16 = vld [vmem:[#allocation8 + $0x40] sm:$0xff]  }
 0x16e   : > { %1338 = vmatprep.subr.bf16.mxu0 %v2367_v39  ;;  %1420 = vmatprep.subr.bf16.mxu1 %v2370_v40  ;;  %v2443_v39 = vld [vmem:[#allocation7 + $0x3c0] ss:$16 sps:$4 sm:$0xff]   ;;  %v2446_v40 = vld [vmem:[#allocation7 + $0x3c8] ss:$16 sps:$4 sm:$0xff]  }
 0x16f   : > { %1368 = vmatprep.mubr.bf16.mxu0 %v504_v42  ;;  %1450 = vmatprep.mubr.bf16.mxu1 %v504_v42  ;;  %v491_v41 = vadd.f32 %v2954_v29, %v362_v36  ;;  %v2451_v42 = vld [vmem:[#allocation7 + $0x3e4] ss:$16 sps:$4 sm:$0xff]   ;;  %v2459_v29 = vld [vmem:[#allocation8 + $0x48] sm:$0xff]  }
 0x171   : > { %1339 = vmatpush1.bf16.msra.mxu0 %v2365_v43  ;;  %1421 = vmatpush1.bf16.msra.mxu1 %v2368_v44  ;;  %v2454_v43 = vld [vmem:[#allocation7 + $0x3ec] ss:$16 sps:$4 sm:$0xff]   ;;  %v2449_v44 = vld [vmem:[#allocation7 + $0x3e0] ss:$16 sps:$4 sm:$0xff]  }
 0x172   : > { %1340 = vmatprep.subr.bf16.mxu0 %v2373_v45  ;;  %1422 = vmatprep.subr.bf16.mxu1 %v2376_v46  ;;  %v2452_v45 = vld [vmem:[#allocation7 + $0x3e8] ss:$16 sps:$4 sm:$0xff]   ;;  %v499_v46 = vmax.f32 %v491_v41, 0.0 }
 0x175   : > { %1341 = vmatpush1.bf16.msra.mxu0 %v2371_v47  ;;  %1423 = vmatpush1.bf16.msra.mxu1 %v2374_v48  ;;  %v2456_v47 = vld [vmem:[#allocation8 + $0xc0] sm:$0xff]  }
 0x176   : > { %1342 = vmatprep.subr.bf16.mxu0 %v2379_v49  ;;  %1424 = vmatprep.subr.bf16.mxu1 %v2382_v50  ;;  %v2457_v48 = vld [vmem:[#allocation8] sm:$0xff]   ;;  %v503_v50 = vpack.c.bf16 %v499_v46, %v499_v46 }
 0x177   : > { %v2458_v49 = vld [vmem:[#allocation8 + $0x80] sm:$0xff]  }
 0x179   : > { %1343 = vmatpush1.bf16.msra.mxu0 %v2377_v51  ;;  %1425 = vmatpush1.bf16.msra.mxu1 %v2380_v52  ;;  %v2460_v51 = vld [vmem:[#allocation8 + $0xc8] sm:$0xff]  }
 0x17a   : > { %1344 = vmatprep.subr.bf16.mxu0 %v2385_v53  ;;  %1426 = vmatprep.subr.bf16.mxu1 %v2388_v54  ;;  %v2461_v52 = vld [vmem:[#allocation8 + $0x8] sm:$0xff]   ;;  %v2463_v54 = vld [vmem:[#allocation8 + $0x50] sm:$0xff]  }
 0x17b   : > { %v2462_v53 = vld [vmem:[#allocation8 + $0x88] sm:$0xff]  }
 0x17d   : > { %1345 = vmatpush1.bf16.msra.mxu0 %v2383_v55  ;;  %1427 = vmatpush1.bf16.msra.mxu1 %v2386_v56  ;;  %v2464_v55 = vld [vmem:[#allocation8 + $0xd0] sm:$0xff]  }
 0x17e   : > { %1346 = vmatprep.subr.bf16.mxu0 %v2391_v57  ;;  %1428 = vmatprep.subr.bf16.mxu1 %v2394_v58  ;;  %v2465_v56 = vld [vmem:[#allocation8 + $0x10] sm:$0xff]   ;;  %v2467_v58 = vld [vmem:[#allocation8 + $0x58] sm:$0xff]  }
 0x17f   : > { %v2466_v57 = vld [vmem:[#allocation8 + $0x90] sm:$0xff]  }
 0x181   : > { %1347 = vmatpush1.bf16.msra.mxu0 %v2389_v59  ;;  %1429 = vmatpush1.bf16.msra.mxu1 %v2392_v60  ;;  %v2468_v59 = vld [vmem:[#allocation8 + $0xd8] sm:$0xff]  }
 0x182   : > { %1348 = vmatprep.subr.bf16.mxu0 %v2397_v61  ;;  %1430 = vmatprep.subr.bf16.mxu1 %v2400_v62  ;;  %v2469_v60 = vld [vmem:[#allocation8 + $0x18] sm:$0xff]   ;;  %v2471_v62 = vld [vmem:[#allocation8 + $0x60] sm:$0xff]  }
 0x183   : > { %v2470_v61 = vld [vmem:[#allocation8 + $0x98] sm:$0xff]  }
 0x185   : > { %1349 = vmatpush1.bf16.msra.mxu0 %v2395_v63  ;;  %1431 = vmatpush1.bf16.msra.mxu1 %v2398_v0  ;;  %v2472_v63 = vld [vmem:[#allocation8 + $0xe0] sm:$0xff]  }
 0x186   : > { %1350 = vmatprep.subr.bf16.mxu0 %v2403_v1  ;;  %1432 = vmatprep.subr.bf16.mxu1 %v2406_v2  ;;  %v2473_v0 = vld [vmem:[#allocation8 + $0x20] sm:$0xff]   ;;  %v2475_v2 = vld [vmem:[#allocation8 + $0x68] sm:$0xff]  }
 0x187   : > { %v2474_v1 = vld [vmem:[#allocation8 + $0xa0] sm:$0xff]  }
 0x189   : > { %1351 = vmatpush1.bf16.msra.mxu0 %v2401_v3  ;;  %1433 = vmatpush1.bf16.msra.mxu1 %v2404_v4  ;;  %v2476_v3 = vld [vmem:[#allocation8 + $0xe8] sm:$0xff]  }
 0x18a   : > { %1352 = vmatprep.subr.bf16.mxu0 %v2409_v5  ;;  %1434 = vmatprep.subr.bf16.mxu1 %v2412_v6  ;;  %v2477_v4 = vld [vmem:[#allocation8 + $0x28] sm:$0xff]   ;;  %v2479_v6 = vld [vmem:[#allocation8 + $0x70] sm:$0xff]  }
 0x18b   : > { %v2478_v5 = vld [vmem:[#allocation8 + $0xa8] sm:$0xff]  }
 0x18d   : > { %1353 = vmatpush1.bf16.msra.mxu0 %v2407_v7  ;;  %1435 = vmatpush1.bf16.msra.mxu1 %v2410_v8  ;;  %v2480_v7 = vld [vmem:[#allocation8 + $0xf0] sm:$0xff]  }
 0x18e   : > { %1354 = vmatprep.subr.bf16.mxu0 %v2415_v9  ;;  %1436 = vmatprep.subr.bf16.mxu1 %v2418_v10  ;;  %v2481_v8 = vld [vmem:[#allocation8 + $0x30] sm:$0xff]   ;;  %v2483_v10 = vld [vmem:[#allocation8 + $0x78] sm:$0xff]  }
 0x18f   : > { %v2482_v9 = vld [vmem:[#allocation8 + $0xb0] sm:$0xff]  }
 0x191   : > { %1355 = vmatpush1.bf16.msra.mxu0 %v2413_v11  ;;  %1437 = vmatpush1.bf16.msra.mxu1 %v2416_v12  ;;  %v2484_v11 = vld [vmem:[#allocation8 + $0xf8] sm:$0xff]  }
 0x192   : > { %1356 = vmatprep.subr.bf16.mxu0 %v2421_v13  ;;  %1438 = vmatprep.subr.bf16.mxu1 %v2424_v18  ;;  %v2485_v12 = vld [vmem:[#allocation8 + $0x38] sm:$0xff]   ;;  %v633_v18 = vld [vmem:[%s3029_s4] sm:$0xf] }
 0x193   : > { %v2486_v13 = vld [vmem:[#allocation8 + $0xb8] sm:$0xff]  }
 0x195   : > { %1357 = vmatpush1.bf16.msra.mxu0 %v2419_v20  ;;  %1439 = vmatpush1.bf16.msra.mxu1 %v2422_v21  ;;  %v638_v20 = vrot.slane %v633_v18, %v353_v15  ;;  %v646_v21 = vrot.slane %v633_v18, %v361_v31 }
 0x196   : > { %1358 = vmatprep.subr.bf16.mxu0 %v2427_v22  ;;  %1440 = vmatprep.subr.bf16.mxu1 %v2430_v23  ;;  %v642_v22 = vrot.slane %v633_v18, %v357_v17  ;;  %v650_v23 = vrot.slane %v633_v18, %v365_v19 }
 0x199   : > { %1359 = vmatpush1.bf16.msra.mxu0 %v2425_v24  ;;  %1441 = vmatpush1.bf16.msra.mxu1 %v2428_v25 }
 0x19a   : > { %1360 = vmatprep.subr.bf16.mxu0 %v2433_v26  ;;  %1442 = vmatprep.subr.bf16.mxu1 %v2436_v27 }
 0x19d   : > { %1361 = vmatpush1.bf16.msra.mxu0 %v2431_v28  ;;  %1443 = vmatpush1.bf16.msra.mxu1 %v2434_v30 }
 0x19e   : > { %1362 = vmatprep.subr.bf16.mxu0 %v2439_v32  ;;  %1444 = vmatprep.subr.bf16.mxu1 %v2442_v33 }
 0x1a1   : > { %1363 = vmatpush1.bf16.msra.mxu0 %v2437_v34  ;;  %1445 = vmatpush1.bf16.msra.mxu1 %v2440_v35 }
 0x1a2   : > { %1364 = vmatprep.subr.bf16.mxu0 %v2445_v37  ;;  %1446 = vmatprep.subr.bf16.mxu1 %v2448_v38 }
 0x1a5   : > { %1365 = vmatpush1.bf16.msra.mxu0 %v2443_v39  ;;  %1447 = vmatpush1.bf16.msra.mxu1 %v2446_v40 }
 0x1a6   : > { %1366 = vmatprep.subr.bf16.mxu0 %v2451_v42  ;;  %1448 = vmatprep.subr.bf16.mxu1 %v2454_v43  ;;  %v2076_v43 = vld [vmem:[%s3031_s6] ss:$0 sm:$0xff] }
 0x1a9   : > { %1367 = vmatpush1.bf16.msra.mxu0 %v2449_v44  ;;  %1449 = vmatpush1.bf16.msra.mxu1 %v2452_v45 }
 0x1aa   : > { %2113 = vmatprep.subr.bf16.mxu0 %v2455_v16  ;;  %2135 = vmatprep.subr.bf16.mxu1 %v2456_v47 }
 0x1ac   : > { %1369 = vmatmul.mubr.bf16.vlgmr.msra.gmra.mrb[4].mxu0 %v503_v50  ;;  %1451 = vmatmul.mubr.bf16.vlgmr.msra.gmra.mrb[4].mxu1 %v503_v50 }
 0x1ad   : > { %2114 = vmatpush3.bf16.msra.mxu0 %v2457_v48  ;;  %2136 = vmatpush3.bf16.msra.mxu1 %v2458_v49 }
 0x1ae   : > { %2115 = vmatprep.subr.bf16.mxu0 %v2459_v29  ;;  %2137 = vmatprep.subr.bf16.mxu1 %v2460_v51 }
 0x1b1   : > { %2116 = vmatpush3.bf16.msra.mxu0 %v2461_v52  ;;  %2138 = vmatpush3.bf16.msra.mxu1 %v2462_v53 }
 0x1b2   : > { %2117 = vmatprep.subr.bf16.mxu0 %v2463_v54  ;;  %2139 = vmatprep.subr.bf16.mxu1 %v2464_v55 }
 0x1b5   : > { %2118 = vmatpush3.bf16.msra.mxu0 %v2465_v56  ;;  %2140 = vmatpush3.bf16.msra.mxu1 %v2466_v57 }
 0x1b6   : > { %2119 = vmatprep.subr.bf16.mxu0 %v2467_v58  ;;  %2141 = vmatprep.subr.bf16.mxu1 %v2468_v59 }
 0x1b9   : > { %2120 = vmatpush3.bf16.msra.mxu0 %v2469_v60  ;;  %2142 = vmatpush3.bf16.msra.mxu1 %v2470_v61 }
 0x1ba   : > { %2121 = vmatprep.subr.bf16.mxu0 %v2471_v62  ;;  %2143 = vmatprep.subr.bf16.mxu1 %v2472_v63 }
 0x1bd   : > { %2122 = vmatpush3.bf16.msra.mxu0 %v2473_v0  ;;  %2144 = vmatpush3.bf16.msra.mxu1 %v2474_v1 }
 0x1be   : > { %2123 = vmatprep.subr.bf16.mxu0 %v2475_v2  ;;  %2145 = vmatprep.subr.bf16.mxu1 %v2476_v3 }
 0x1c1   : > { %2124 = vmatpush3.bf16.msra.mxu0 %v2477_v4  ;;  %2146 = vmatpush3.bf16.msra.mxu1 %v2478_v5 }
 0x1c2   : > { %2125 = vmatprep.subr.bf16.mxu0 %v2479_v6  ;;  %2147 = vmatprep.subr.bf16.mxu1 %v2480_v7 }
 0x1c5   : > { %2126 = vmatpush3.bf16.msra.mxu0 %v2481_v8  ;;  %2148 = vmatpush3.bf16.msra.mxu1 %v2482_v9 }
 0x1c6   : > { %2127 = vmatprep.subr.bf16.mxu0 %v2483_v10  ;;  %2149 = vmatprep.subr.bf16.mxu1 %v2484_v11 }
 0x1c9   : > { %2128 = vmatpush3.bf16.msra.mxu0 %v2485_v12  ;;  %2150 = vmatpush3.bf16.msra.mxu1 %v2486_v13 }
 0x27f   : > { %v1370_v24 = vpop.f32.mrb[4].mxu0  ;;  %v1452_v25 = vpop.f32.mrb[4].mxu1 }
 0x280   : > { %v2157_v26 = vadd.f32 %v1370_v24, %v638_v20  ;;  %v2159_v27 = vadd.f32 %v1452_v25, %v646_v21  ;;  %v1372_v28 = vpop.f32.mrb[5].mxu0  ;;  %v1454_v30 = vpop.f32.mrb[5].mxu1 }
 0x281   : > { %v2158_v32 = vadd.f32 %v1372_v28, %v642_v22  ;;  %v2160_v33 = vadd.f32 %v1454_v30, %v650_v23  ;;  %v1374_v34 = vpop.f32.mrb[6].mxu0  ;;  %v1456_v35 = vpop.f32.mrb[6].mxu1 }
 0x282   : > { %v1459_v15 = vmax.f32 %v2157_v26, 0.0  ;;  %v1461_v36 = vmax.f32 %v2159_v27, 0.0  ;;  %v1375_v37 = vpop.f32.mrb[7].mxu0  ;;  %v1457_v31 = vpop.f32.mrb[7].mxu1 }
 0x283   : > { %v1460_v38 = vmax.f32 %v2158_v32, 0.0  ;;  %v1462_v39 = vmax.f32 %v2160_v33, 0.0 }
 0x284   : > { %v1463_v14 = vpack.c.bf16 %v1459_v15, %v1459_v15  ;;  %v1465_v19 = vpack.c.bf16 %v1461_v36, %v1461_v36 }
 0x285   : > { %v1464_v17 = vpack.c.bf16 %v1460_v38, %v1460_v38  ;;  %v1466_v40 = vpack.c.bf16 %v1462_v39, %v1462_v39 }
 0x287   : > { %1762 = vmatprep.mubr.bf16.mxu0 %v1464_v17  ;;  %1802 = vmatprep.mubr.bf16.mxu1 %v1466_v40 }
 0x288   : > { %1763 = vmatmul.mubr.bf16.vlgmr.msra.gmra.mrb[8].mxu0 %v1463_v14  ;;  %1803 = vmatmul.mubr.bf16.vlgmr.msra.gmra.mrb[8].mxu1 %v1465_v19 }
 0x35b   : > { %v2129_v41 = vpop.f32.mrb[8].mxu0  ;;  %v2151_v42 = vpop.f32.mrb[8].mxu1 }
 0x35c   : > { %v2130_v44 = vpop.f32.mrb[9].mxu0  ;;  %v2152_v45 = vpop.f32.mrb[9].mxu1 }
 0x35d   : > { %v2131_v46 = vadd.f32 %v2130_v44, %v2129_v41  ;;  %v2153_v16 = vadd.f32 %v2152_v45, %v2151_v42  ;;  %v2132_v47 = vpop.f32.mrb[10].mxu0  ;;  %v2154_v48 = vpop.f32.mrb[10].mxu1 }
 0x35e   : > { %v2133_v49 = vpop.f32.mrb[11].mxu0  ;;  %v2155_v50 = vpop.f32.mrb[11].mxu1 }
 0x35f   : > { %v1765_v29 = vadd.f32 %v2131_v46, %v2076_v43 }
 0x361   : > { %v1805_v51 = vadd.f32 %v2153_v16, %v1765_v29 }
 0x363   : > { %1810 = vst [vmem:[%s337_s12] sm:$0xff] %v1805_v51 }
 0x364   : > { %2614 = shalt.err (!%p2611_p4)
}
 0x365   : > { %s2615_s15 = scalar_lea.hbm %s2981_s21, 128  ;;  %s2619_s22 = scalar_lea.hbm %s3032_s7, 256 }
 0x366   : > { %p2616_p0 = scmp.ne.s32.totalorder %s2981_s21, %s2615_s15  ;;  %p2620_p8 = scmp.lt.u32.totalorder %s2981_s21, %s3032_s7 }
 0x367   : > { %p2621_p13 = scmp.lt.u32.totalorder %s2619_s22, %s2615_s15  ;;  %p2623_p10 = scmp.lt.u32.totalorder %s2615_s15, %s2981_s21 }
 0x368   : > { %p2617_p9 = pnand %p2616_p0, %p2872_p5 }
 0x369   : > { %p2622_p6 = por %p2621_p13, %p2620_p8 }
 0x36a   : > { %p2618_p11 = pneg %p2617_p9 }
 0x36b   : > { %p2624_p3 = por %p2623_p10, %p2622_p6 }
 0x36d   : > { %p2625_p7 = pnand %p2624_p3, %p2618_p11 }
 0x36f   : > { %2628 = shalt.err (!%p2625_p7)
}
 0x370   : > { %2183 = dma.vmem_to_hbm [thread:$0]  (%p2872_p5), %s2983_s29, 128, %s2981_s21, %s1812_s16  }
 0x371 PF: > { %s3052_s12 = sld [smem:[#allocation15_spill]]  ;;  %s1837_s11 = sand.u32 1, %s2663_s24  }
 0x372   : > { %p3054_p2 = scmp.ge.s32.totalorder %s2675_s27, 2  ;;  %s1838_s17 = scalar_lea.sflag [#allocation4], %s1837_s11 }
 0x377   : > { %p3053_p12 = scmp.ne.s32.totalorder %s3052_s12, 0 }
 0x379   : > { %p2200_p1 = pnand %p3054_p2, %p3053_p12 }
 0x37b   : > { %2658 = dma.done.wait (!%p2200_p1), %s1838_s17, 128  }
 0x37c   : > { %2660 = vsyncadd (!%p2200_p1), %s1838_s17, 4294967168  ;;  %p22_p4 = scmp.ge.s32.totalorder %s2858_s8, 4   ;;  %s3055_s24 = smov %s2667_s25 }
 0x37d   : > { %s3056_s25 = smov %s2671_s26  ;;  %s3057_s26 = smov %s2868_s19 }
 0x37e   : > { %s3058_s27 = smov %s2858_s8  ;;  %24 = sbr.rel (!%p22_p4) target bundleno = 7 (0x7), region = 105 }
 0x385   :  { %1843 = vsyncpa [#allocation3], 1 }
 0x386   :  { %1845 = vsyncpa [#allocation3 + $0x1], 1 }
 0x387   :  { %1846 = vsyncpa [#allocation6], 1 }
 0x388   :  { %1847 = vsyncpa [#allocation9], 1 }
 0x389   :  { %1848 = vsyncpa [#allocation4], 1 }
 0x38a   :  { %1850 = vsyncpa [#allocation4 + $0x1], 1 }

</bundles_post_ra>
